<compile_context>
chip_gen: v5e
topology: v5e:2x2
jax: 0.10.0
libtpu: 0.0.40
codegen_flags: <defaults>
</compile_context>

<pallas_src>
import functools

import jax
import jax.numpy as jnp
import numpy as np
from jax.experimental import pallas as pl
from jax.experimental.pallas import tpu as pltpu


def _round_up(x, m):
    return ((x + m - 1) // m) * m


# ----------------------------------------------------------------------------
# Pallas kernel: normalize over time -> single fused matmul (+bias) -> de-normalize.
# Block layout: x (1, L, tile_c), basis (out_len, L), bias (out_len, 1),
#               out (1, out_len, tile_c).  Channels live on lanes, time on sublanes.
# ----------------------------------------------------------------------------
def _fits_kernel(seq_len, x_ref, mt_ref, b_ref, out_ref):
    x = x_ref[0]                                                  # (L, tile_c) f32

    # Instance normalization over time (torch.var is unbiased: /(L-1); +1e-5 on var).
    mean = jnp.mean(x, axis=0, keepdims=True)                     # (1, tile_c)
    diff = x - mean
    var = jnp.sum(diff * diff, axis=0, keepdims=True) * (1.0 / (seq_len - 1)) + 1e-5
    inv_std = jax.lax.rsqrt(var)                                  # EUP rsqrt (no sqrt + div)
    std = var * inv_std                                           # == sqrt(var)
    xn = diff * inv_std                                           # normalized series

    # Precomposed rfft -> complex linear -> zero-padded irfft -> scale -> crop:
    # one MXU matmul over K = seq_len, f32 accumulation.
    y = jnp.dot(mt_ref[...], xn.astype(mt_ref.dtype),
                preferred_element_type=jnp.float32)               # (out_len, tile_c)

    # Add the precomposed bias column and de-normalize; store straight into the
    # native (B, out_len, C) output (no wrapper crop / transpose afterwards).
    out_ref[0] = ((y + b_ref[...]) * std + mean).astype(out_ref.dtype)


# ----------------------------------------------------------------------------
# VMEM accounting (lane/sublane-padded, double-buffered) + channel-tile sizing.
# ----------------------------------------------------------------------------
def _block_vmem_bytes(seq_len, out_len, tile_c, out_itemsize, basis_itemsize):
    """Real VMEM footprint of one pipeline stage: padded blocks x their buffer counts."""
    lanes = _round_up(tile_c, 128)
    x_blk = _round_up(seq_len, 8) * lanes * 4                  # f32 input block
    out_blk = _round_up(out_len, 8) * lanes * out_itemsize
    mt_blk = _round_up(out_len, 8) * _round_up(seq_len, 128) * basis_itemsize
    b_blk = _round_up(out_len, 8) * 128 * 4
    # x / out are double-buffered by the pipeline; the constant-index basis / bias also get
    # 2 buffers by default (TODO(synk): pipeline_mode=pl.Buffered(1) once universally safe).
    return 2 * (x_blk + out_blk) + 2 * (mt_blk + b_blk)


def _choose_tile_c(batch, channels, seq_len, out_len, out_itemsize, basis_itemsize,
                   budget_bytes):
    """Channel-tile width: full channel dim when <=128, else multiples of 128 sized so the
    double-buffered footprint stays under the (generation-safe) budget."""
    def fits(tc):
        return _block_vmem_bytes(seq_len, out_len, tc, out_itemsize,
                                 basis_itemsize) <= budget_bytes

    if channels <= 128:
        return channels                      # full-dim last-axis block is always legal
    tc = _round_up(channels, 128)
    if batch == 1:
        # Keep >= 2 grid steps so the "parallel" grid can shard across v7x's two TCs.
        tc = min(tc, _round_up(pl.cdiv(channels, 2), 128))
    while tc > 128 and not fits(tc):
        tc -= 128
    return max(tc, 128)


# ----------------------------------------------------------------------------
# pallas_call wrapper: consumes/produces the native (B, L, C) / (B, out_len, C) layout.
# ----------------------------------------------------------------------------
def fits_forward_pallas(x, mt, b_col, *, tile_c=None, out_dtype=jnp.float32,
                        vmem_budget_bytes=40 << 20):
    """x: (B, seq_len, C) f32.  mt: (out_len, seq_len) basis.  b_col: (out_len, 1) f32.
    Returns (B, out_len, C) in `out_dtype` (out_len = seq_len + pred_len)."""
    batch, seq_len, channels = x.shape
    out_len = mt.shape[0]
    assert mt.shape[1] == seq_len

    out_itemsize = jnp.dtype(out_dtype).itemsize
    basis_itemsize = jnp.dtype(mt.dtype).itemsize
    if tile_c is None:
        tile_c = _choose_tile_c(batch, channels, seq_len, out_len,
                                out_itemsize, basis_itemsize, vmem_budget_bytes)

    # Explicit, generation-safe VMEM limit computed from the real footprint
    # (>= v5e's 16 MiB default so small configs never regress, <= 48 MiB for v7x's 64 MiB).
    vmem_bytes = _block_vmem_bytes(seq_len, out_len, tile_c, out_itemsize, basis_itemsize)
    vmem_limit = int(min(max(vmem_bytes + (4 << 20), 16 << 20), 48 << 20))

    kernel = functools.partial(_fits_kernel, seq_len)
    grid = (batch, pl.cdiv(channels, tile_c))
    return pl.pallas_call(
        kernel,
        grid=grid,
        in_specs=[
            pl.BlockSpec((1, seq_len, tile_c), lambda b, c: (b, 0, c)),   # native x tile
            pl.BlockSpec((out_len, seq_len), lambda b, c: (0, 0)),        # resident basis
            pl.BlockSpec((out_len, 1), lambda b, c: (0, 0)),              # resident bias
        ],
        out_specs=pl.BlockSpec((1, out_len, tile_c), lambda b, c: (b, 0, c)),
        out_shape=jax.ShapeDtypeStruct((batch, out_len, channels), out_dtype),
        compiler_params=pltpu.CompilerParams(
            dimension_semantics=("parallel", "parallel"),
            vmem_limit_bytes=vmem_limit),
    )(x, mt, b_col)


# ----------------------------------------------------------------------------
# Offline precomposition (float64 numpy): constants of the model.
# ----------------------------------------------------------------------------
def build_fits_operator(wre, wim, bre, bim, *, seq_len, pred_len, dominance_freq,
                        basis_dtype=jnp.bfloat16):
    """Precompose rfft -> complex linear -> zero-padded irfft -> *total_len/seq_len -> crop
    into M^T (out_len, seq_len) and a bias column (out_len, 1).  basis_dtype=f32 is the
    precision fallback for large production configs."""
    end_up = int(0.1 * seq_len)
    total_len = seq_len + pred_len + 2 * end_up
    spec_len = total_len // 2 + 1
    irfft_n = 2 * (spec_len - 1)                 # torch.fft.irfft default output length
    out_len = irfft_n - 2 * end_up               # == seq_len + pred_len for even total_len
    cutoff = dominance_freq
    cutoff_out = int(cutoff * total_len / seq_len)

    # rfft basis restricted to the first `cutoff` bins: (L, CF).
    n = np.arange(seq_len, dtype=np.float64)[:, None]
    k = np.arange(cutoff, dtype=np.float64)[None, :]
    ang = 2.0 * np.pi * n * k / seq_len
    rcos = np.cos(ang)
    rsin = -np.sin(ang)

    # irfft basis restricted to the first `cutoff_out` bins: (CFo, irfft_n), with the crop
    # [end_up : end_up+out_len] and the total_len/seq_len scale folded in.
    kk = np.arange(cutoff_out, dtype=np.float64)[:, None]
    t = np.arange(irfft_n, dtype=np.float64)[None, :]
    ang2 = 2.0 * np.pi * kk * t / irfft_n
    w = np.where((kk == 0) | (kk == irfft_n // 2), 1.0, 2.0)
    scale = float(total_len) / float(seq_len)
    icos = (w * np.cos(ang2) / irfft_n)[:, end_up:end_up + out_len] * scale
    isin = (-w * np.sin(ang2) / irfft_n)[:, end_up:end_up + out_len] * scale

    # Complex linear layer y = f @ W^T + b expanded into real matrices and fused.
    wre64 = np.asarray(wre, np.float64).T          # (CF, CFo)
    wim64 = np.asarray(wim, np.float64).T
    a = wre64 @ icos + wim64 @ isin                # (CF, out_len)
    b = wre64 @ isin - wim64 @ icos                # (CF, out_len)
    m = rcos @ a + rsin @ b                        # (seq_len, out_len)
    bias = np.asarray(bre, np.float64) @ icos + np.asarray(bim, np.float64) @ isin

    mt = jnp.asarray(m.T, basis_dtype)             # (out_len, seq_len) MXU operand
    b_col = jnp.asarray(bias[:, None], jnp.float32)
    meta = dict(out_len=out_len, total_len=total_len,
                end_upsample=end_up, cutoff_out=cutoff_out)
    return mt, b_col, meta


# ----------------------------------------------------------------------------
# Pure-JAX reference (mirrors the PyTorch forward exactly) for a sanity check.
# ----------------------------------------------------------------------------
def fits_reference(x, wre, wim, bre, bim, *, cutoff, cutoff_out,
                   seq_len, total_len, end_upsample, out_len):
    mean = jnp.mean(x, axis=1, keepdims=True)
    var = jnp.var(x, axis=1, keepdims=True, ddof=1) + 1e-5
    xn = (x - mean) / jnp.sqrt(var)
    freq = jnp.fft.rfft(xn, axis=1)[:, :cutoff, :]                      # (B, CF, C)
    w = wre + 1j * wim                                                  # (CFo, CF)
    b = bre + 1j * bim                                                  # (CFo,)
    y = jnp.einsum('bkc,ok->boc', freq, w) + b[None, :, None]           # (B, CFo, C)
    spec = jnp.zeros((x.shape[0], total_len // 2 + 1, x.shape[2]), dtype=y.dtype)
    spec = spec.at[:, :cutoff_out, :].set(y)
    t = jnp.fft.irfft(spec, axis=1) * (total_len / seq_len)
    t = t[:, end_upsample:end_upsample + out_len, :]
    return t * jnp.sqrt(var) + mean


# ----------------------------------------------------------------------------
if __name__ == "__main__":
    # Model hyper-parameters (small, consistent with the module's __init__).
    batch = 2
    channels = 4
    seq_len = 32
    pred_len = 16
    dominance_freq = 8                                       # cutoff frequency
    end_upsample = int(0.1 * seq_len)                        # 3
    total_len = seq_len + pred_len + 2 * end_upsample        # 54
    cutoff_out = int(dominance_freq * total_len / seq_len)   # 13

    # Deterministic inputs / parameters.
    key = jax.random.PRNGKey(0)
    kx, kwr, kwi, kbr, kbi = jax.random.split(key, 5)
    x = jax.random.normal(kx, (batch, seq_len, channels), dtype=jnp.float32)

    scale = 1.0 / np.sqrt(dominance_freq)
    wre = scale * jax.random.normal(kwr, (cutoff_out, dominance_freq), dtype=jnp.float32)
    wim = scale * jax.random.normal(kwi, (cutoff_out, dominance_freq), dtype=jnp.float32)
    bre = scale * jax.random.normal(kbr, (cutoff_out,), dtype=jnp.float32)
    bim = scale * jax.random.normal(kbi, (cutoff_out,), dtype=jnp.float32)

    # Precompose the whole frequency pipeline into one matrix + bias (constants).
    mt, b_col, meta = build_fits_operator(
        wre, wim, bre, bim,
        seq_len=seq_len, pred_len=pred_len, dominance_freq=dominance_freq)
    out_len = meta["out_len"]

    # Kernel runs straight on the native (B, L, C) layout; no pad / transpose / crop.
    out = fits_forward_pallas(x, mt, b_col)
    out = jax.block_until_ready(out)

    # Sanity check against the pure-JAX FFT reference.
    ref = fits_reference(x, wre, wim, bre, bim,
                         cutoff=dominance_freq, cutoff_out=cutoff_out,
                         seq_len=seq_len, total_len=meta["total_len"],
                         end_upsample=meta["end_upsample"], out_len=out_len)
    err = float(jnp.max(jnp.abs(out - ref)))
    assert out.shape == (batch, out_len, channels), out.shape
    assert np.isfinite(np.asarray(out)).all()
    # bf16 MXU operands with f32 accumulation over K=seq_len at unit-scale inputs give
    # ~1e-3..1e-2 abs error vs the f32 FFT reference; 3e-2 still catches structural bugs.
    assert err < 3e-2, f"max abs error vs reference: {err}"

    print("KERNEL_OK")
</pallas_src>

<mosaic_0001>
module attributes {stable_mosaic.version = 11 : i64} {
  func.func @_fits_kernel(%arg0: i32, %arg1: i32, %arg2: memref<1x32x4xf32, #tpu.memory_space<vmem>>, %arg3: memref<48x32xbf16, #tpu.memory_space<vmem>>, %arg4: memref<48x1xf32, #tpu.memory_space<vmem>>, %arg5: memref<1x48x4xf32, #tpu.memory_space<vmem>>) attributes {dimension_semantics = [#tpu.dimension_semantics<parallel>, #tpu.dimension_semantics<parallel>], iteration_bounds = array<i64: 2, 1>, scalar_prefetch = 0 : i64, scratch_operands = 0 : i64, tpu.core_type = #tpu.core_type<tc>, window_params = [{transform_indices = @transform_0, window_bounds = array<i64: 1, 32, 4>}, {pipeline_mode = #tpu.pipeline_mode<synchronous>, transform_indices = @transform_1, window_bounds = array<i64: 48, 32>}, {pipeline_mode = #tpu.pipeline_mode<synchronous>, transform_indices = @transform_2, window_bounds = array<i64: 48, 1>}, {transform_indices = @transform_3, window_bounds = array<i64: 1, 48, 4>}]} {
    %c0 = arith.constant 0 : index
    %c0_0 = arith.constant 0 : index
    %c0_1 = arith.constant 0 : index
    %0 = vector.load %arg2[%c0, %c0_0, %c0_1] : memref<1x32x4xf32, #tpu.memory_space<vmem>>, vector<1x32x4xf32>
    %1 = vector.shape_cast %0 : vector<1x32x4xf32> to vector<32x4xf32>
    %cst = arith.constant dense<0.000000e+00> : vector<4xf32>
    %2 = vector.multi_reduction <add>, %1, %cst [0] : vector<32x4xf32> to vector<4xf32>
    %3 = vector.shape_cast %2 : vector<4xf32> to vector<1x4xf32>
    %cst_2 = arith.constant 3.200000e+01 : f32
    %4 = vector.broadcast %cst_2 : f32 to vector<1x4xf32>
    %5 = arith.divf %3, %4 : vector<1x4xf32>
    %6 = vector.broadcast %5 : vector<1x4xf32> to vector<32x4xf32>
    %7 = arith.subf %1, %6 : vector<32x4xf32>
    %8 = arith.mulf %7, %7 : vector<32x4xf32>
    %cst_3 = arith.constant dense<0.000000e+00> : vector<4xf32>
    %9 = vector.multi_reduction <add>, %8, %cst_3 [0] : vector<32x4xf32> to vector<4xf32>
    %10 = vector.shape_cast %9 : vector<4xf32> to vector<1x4xf32>
    %cst_4 = arith.constant 0.0322580636 : f32
    %11 = vector.broadcast %cst_4 : f32 to vector<1x4xf32>
    %12 = arith.mulf %10, %11 : vector<1x4xf32>
    %cst_5 = arith.constant 9.99999974E-6 : f32
    %13 = vector.broadcast %cst_5 : f32 to vector<1x4xf32>
    %14 = arith.addf %12, %13 : vector<1x4xf32>
    %15 = math.rsqrt %14 : vector<1x4xf32>
    %16 = arith.mulf %14, %15 : vector<1x4xf32>
    %17 = vector.broadcast %15 : vector<1x4xf32> to vector<32x4xf32>
    %18 = arith.mulf %7, %17 : vector<32x4xf32>
    %c0_6 = arith.constant 0 : index
    %c0_7 = arith.constant 0 : index
    %19 = vector.load %arg3[%c0_6, %c0_7] : memref<48x32xbf16, #tpu.memory_space<vmem>>, vector<48x32xbf16>
    %20 = arith.truncf %18 : vector<32x4xf32> to vector<32x4xbf16>
    %cst_8 = arith.constant dense<0.000000e+00> : vector<48x4xf32>
    %21 = tpu.matmul %19, %20, %cst_8 {dimension_numbers = #tpu.dot_dimension_numbers<[1], [0], [0], [1], [0, 0, 1, 1], [], []>} : vector<48x32xbf16>, vector<32x4xbf16>, vector<48x4xf32> -> vector<48x4xf32>
    %c0_9 = arith.constant 0 : index
    %c0_10 = arith.constant 0 : index
    %22 = vector.load %arg4[%c0_9, %c0_10] : memref<48x1xf32, #tpu.memory_space<vmem>>, vector<48x1xf32>
    %23 = vector.broadcast %22 : vector<48x1xf32> to vector<48x4xf32>
    %24 = arith.addf %21, %23 : vector<48x4xf32>
    %25 = vector.broadcast %16 : vector<1x4xf32> to vector<48x4xf32>
    %26 = arith.mulf %24, %25 : vector<48x4xf32>
    %27 = vector.broadcast %5 : vector<1x4xf32> to vector<48x4xf32>
    %28 = arith.addf %26, %27 : vector<48x4xf32>
    %c0_11 = arith.constant 0 : index
    %c0_12 = arith.constant 0 : index
    %c0_13 = arith.constant 0 : index
    %29 = vector.load %arg5[%c0_11, %c0_12, %c0_13] : memref<1x48x4xf32, #tpu.memory_space<vmem>>, vector<1x48x4xf32>
    %30 = vector.shape_cast %29 : vector<1x48x4xf32> to vector<48x4xf32>
    %31 = vector.shape_cast %28 : vector<48x4xf32> to vector<1x48x4xf32>
    tpu.vector_store %arg5[%c0_11, %c0_12, %c0_13], %31 {strides = array<i32>} : memref<1x48x4xf32, #tpu.memory_space<vmem>>, vector<1x48x4xf32>,
    return
  }
  func.func @transform_0(%arg0: i32, %arg1: i32) -> (i32, i32, i32) {
    %c0_i32 = arith.constant 0 : i32
    %c0_i32_0 = arith.constant 0 : i32
    return %arg0, %c0_i32, %arg1 : i32, i32, i32
  }
  func.func @transform_1(%arg0: i32, %arg1: i32) -> (i32, i32) {
    %c0_i32 = arith.constant 0 : i32
    %c0_i32_0 = arith.constant 0 : i32
    %c0_i32_1 = arith.constant 0 : i32
    return %c0_i32, %c0_i32_0 : i32, i32
  }
  func.func @transform_2(%arg0: i32, %arg1: i32) -> (i32, i32) {
    %c0_i32 = arith.constant 0 : i32
    %c0_i32_0 = arith.constant 0 : i32
    %c0_i32_1 = arith.constant 0 : i32
    return %c0_i32, %c0_i32_0 : i32, i32
  }
  func.func @transform_3(%arg0: i32, %arg1: i32) -> (i32, i32, i32) {
    %c0_i32 = arith.constant 0 : i32
    %c0_i32_0 = arith.constant 0 : i32
    return %arg0, %c0_i32, %arg1 : i32, i32, i32
  }
}

</mosaic_0001>

<bundles_post_ra>
// kernel: tpu_custom_call.1
= control target key start
LH: loop header
LB: loop body
LE: loop exit
PB: predicated region body
PF: predicated region fallthrough
CT: control target
= control target key end

     0   :  { %s574_s12 = smov 0   ;;  %s576_s13 = smov 0   ;;  %s664_s0 = inlined_call_operand.vmem [shape: f32[2,32,4], index: 0, kind: input, shape index: {}]   ;;  %s665_s1 = inlined_call_operand.vmem [shape: bf16[48,32], index: 1, kind: input, shape index: {}]   ;;  %s666_s2 = inlined_call_operand.vmem [shape: f32[48,1], index: 2, kind: input, shape index: {}]   ;;  %s667_s3 = inlined_call_operand.vmem [shape: f32[2,48,4], index: 3, kind: output, shape index: {}]  }
   0x1   :  { %s578_s14 = smov 0  }
   0x2 LB: > { %s25_s15 = sadd.s32 1, %s546_s13  ;;  %p465_p0 = scmp.ge.s32.totalorder %s550_s14, 1  ;;  %s550_s14 = sphi %s578_s14, %s13_s14   ;;  %s546_s13 = sphi %s576_s13, %s669_s13   ;;  %s542_s12 = sphi %s574_s12, %s668_s12  }
   0x3   : > { %p27_p1 = scmp.ge.s32.totalorder %s25_s15, 2  ;;  %p156_p2 = scmp.lt.s32.totalorder %s550_s14, 3 }
   0x5   : > { %s671_s15 = smov (%p27_p1, %s25_s15), 0  ;;  %p157_p3 = pnand %p465_p0, %p156_p2 }
   0x6   : > { %p186_p4 = scmp.lt.s32.totalorder (!%p157_p3), %s542_s12, 1 }
   0x7   : > { %160 = sbr.rel (%p157_p3) target bundleno = 241 (0xf1), region = 32 }
   0xc   : > { %v552_v0 = vmov 32.0   ;;  %s673_s12 = smov (!%p186_p4, %s542_s12), 1  ;;  %vm207_vm0 = vcmask 31744   ;;  %v277_v48 = vld [vmem:[%s666_s2 + $0x10] sm:$0xff]  ;;  %v275_v49 = vld [vmem:[%s666_s2] sm:$0xff]  ;;  %v553_v50 = vmov 0  }
   0xd   : > { %524 = vrcp.f32 %v552_v0  ;;  %s486_s16 = sshll.u32 %s673_s12, 5  ;;  %522 = vset.pattern.permute.xlu1 %v553_v50  ;;  %521 = vset.pattern.permute.xlu0 %v553_v50  ;;  %v279_v51 = vld [vmem:[%s666_s2 + $0x20] sm:$0xff]  ;;  %v278_v52 = vld [vmem:[%s666_s2 + $0x18] sm:$0xff]  ;;  %v276_v53 = vld [vmem:[%s666_s2 + $0x8] sm:$0xff]  ;;  %vm326_vm5 = vcmask 261120   ;;  %s494_s11 = smul.u32 48, %s673_s12 }
   0xe   : > { %s193_s19 = scalar_lea.vmem %s664_s0, %s486_s16  ;;  %293 = vperm.xlu1 %522, %v277_v48   ;;  %283 = vperm.xlu0 %521, %v275_v49   ;;  %v280_v56 = vld [vmem:[%s666_s2 + $0x28] sm:$0xff] }
   0xf   : > { %v203_v1 = vld [vmem:[%s193_s19] sm:$0xff]  ;;  %v204_v2 = vld [vmem:[%s193_s19 + $0x8] sm:$0xff]  ;;  %v205_v3 = vld [vmem:[%s193_s19 + $0x10] sm:$0xff]  ;;  %523 = vset.pattern.permute.xlu2 %v553_v50  ;;  %s201_s18 = scalar_lea.vmem %s667_s3, %s494_s11 }
  0x10   : > { %v206_v5 = vld [vmem:[%s193_s19 + $0x18] sm:$0xff]  ;;  %v208_v6 = vsel %vm207_vm0, %v203_v1, 0.0  ;;  %v209_v7 = vsel %vm207_vm0, %v204_v2, 0.0  ;;  %v211_v8 = vsel %vm207_vm0, %v205_v3, 0.0  ;;  %303 = vperm.xlu2 %523, %v279_v51  }
  0x11   : > { %v210_v9 = vadd.f32 %v209_v7, %v208_v6  ;;  %v213_v11 = vsel %vm207_vm0, %v206_v5, 0.0  ;;  %v488_v6 = vld [vmem:[%s665_s1 + $0x8] sm:$0xff]  ;;  %v489_v7 = vld [vmem:[%s665_s1 + $0x10] sm:$0xff] }
  0x13   : > { %v525_v4 = vpop.eup %524  ;;  %v212_v12 = vadd.f32 %v211_v8, %v210_v9 }
  0x14   : > { %v222_v10 = vmul.f32 32.0, %v525_v4  ;;  %vm226_vm1 = vweird.f32 %v525_v4 }
  0x15   : > { %v214_v14 = vadd.f32 %v213_v11, %v212_v12 }
  0x16   : > { %v223_v13 = vsub.f32 1.0, %v222_v10  ;;  %298 = vperm.xlu1 %522, %v278_v52   ;;  %288 = vperm.xlu0 %521, %v276_v53  }
  0x17   : > { %v215_v15 = vrot.slane %v214_v14, 4 }
  0x18   : > { %v224_v16 = vmul.f32 %v525_v4, %v223_v13  ;;  %308 = vperm.xlu2 %523, %v280_v56  }
  0x19   : > { %v216_v17 = vadd.f32 %v215_v15, %v214_v14 }
  0x1a   : > { %v225_v19 = vadd.f32 %v525_v4, %v224_v16 }
  0x1b   : > { %v217_v18 = vrot.slane %v216_v17, 2 }
  0x1c   : > { %v227_v22 = vsel %vm226_vm1, %v525_v4, %v225_v19 }
  0x1d   : > { %v218_v20 = vadd.f32 %v217_v18, %v216_v17 }
  0x1f   : > { %v219_v21 = vrot.slane %v218_v20, 1 }
  0x21   : > { %v220_v23 = vadd.f32 %v219_v21, %v218_v20 }
  0x23   : > { %v602_v24 = vmul.f32 %v227_v22, %v220_v23 }
  0x25   : > { %v229_v25 = vsub.f32 %v203_v1, %v602_v24  ;;  %v230_v26 = vsub.f32 %v204_v2, %v602_v24  ;;  %v231_v27 = vsub.f32 %v205_v3, %v602_v24  ;;  %v232_v28 = vsub.f32 %v206_v5, %v602_v24  ;;  %v487_v5 = vld [vmem:[%s665_s1] sm:$0xff] }
  0x27   : > { %v233_v29 = vmul.f32 %v229_v25, %v229_v25  ;;  %v234_v30 = vmul.f32 %v230_v26, %v230_v26  ;;  %v235_v31 = vmul.f32 %v231_v27, %v231_v27  ;;  %v236_v32 = vmul.f32 %v232_v28, %v232_v28 }
  0x29   : > { %v237_v33 = vsel %vm207_vm0, %v233_v29, 0.0  ;;  %v238_v34 = vsel %vm207_vm0, %v234_v30, 0.0  ;;  %v240_v35 = vsel %vm207_vm0, %v235_v31, 0.0  ;;  %v242_v37 = vsel %vm207_vm0, %v236_v32, 0.0 }
  0x2a   : > { %v239_v36 = vadd.f32 %v238_v34, %v237_v33 }
  0x2c   : > { %v241_v38 = vadd.f32 %v240_v35, %v239_v36 }
  0x2e   : > { %v243_v39 = vadd.f32 %v242_v37, %v241_v38 }
  0x30   : > { %v244_v40 = vrot.slane %v243_v39, 4 }
  0x32   : > { %v245_v41 = vadd.f32 %v244_v40, %v243_v39 }
  0x34   : > { %v246_v42 = vrot.slane %v245_v41, 2 }
  0x36   : > { %v247_v43 = vadd.f32 %v246_v42, %v245_v41 }
  0x38   : > { %v248_v44 = vrot.slane %v247_v43, 1 }
  0x3a   : > { %v249_v45 = vadd.f32 %v248_v44, %v247_v43 }
  0x3c   : > { %v250_v46 = vmul.f32 0.032258064, %v249_v45 }
  0x3e   : > { %v251_v47 = vadd.f32 1e-05, %v250_v46 }
  0x40   : > { %526 = vrsqrt.f32 %v251_v47  ;;  %vm258_vm2 = vweird.f32 %v251_v47 }
  0x46   : > { %v527_v54 = vpop.eup %526 }
  0x47   : > { %v253_v55 = vmul.f32 %v527_v54, %v251_v47  ;;  %vm259_vm3 = vweird.f32 %v527_v54 }
  0x48   : > { %vm260_vm4 = vmor %vm258_vm2, %vm259_vm3 }
  0x49   : > { %v254_v57 = vmul.f32 %v527_v54, %v253_v55 }
  0x4b   : > { %v255_v58 = vmul.f32 0.5, %v254_v57 }
  0x4d   : > { %v256_v59 = vsub.f32 1.5, %v255_v58 }
  0x4f   : > { %v257_v60 = vmul.f32 %v527_v54, %v256_v59 }
  0x51   : > { %v261_v61 = vsel %vm260_vm4, %v527_v54, %v257_v60 }
  0x52   : > { %v262_v62 = vmul.f32 %v261_v61, %v251_v47  ;;  %v265_v63 = vmul.f32 %v261_v61, %v231_v27  ;;  %v266_v0 = vmul.f32 %v261_v61, %v232_v28  ;;  %v263_v1 = vmul.f32 %v261_v61, %v229_v25 }
  0x53   : > { %v264_v2 = vmul.f32 %v261_v61, %v230_v26 }
  0x54   : > { %v274_v3 = vpack.c.bf16 %v266_v0, %v265_v63 }
  0x55   : > { %v273_v4 = vpack.c.bf16 %v264_v2, %v263_v1 }
  0x56   : > { %342 = vmatpush.bf16.msra.mxu0 %v274_v3  ;;  %490 = vmatpush.bf16.msra.mxu1 %v274_v3 }
  0x57   : > { %491 = vmatpush.bf16.msra.mxu2 %v274_v3 }
  0x5a   : > { %343 = vmatpush.bf16.msra.mxu0 %v273_v4  ;;  %492 = vmatpush.bf16.msra.mxu1 %v273_v4 }
  0x5b   : > { %493 = vmatpush.bf16.msra.mxu2 %v273_v4 }
  0x5d   : > { %481 = vmatmul.msk.bf16.vlgmr.msra.gmra.mxu0 %vm326_vm5, %v487_v5  ;;  %482 = vmatmul.msk.bf16.vlgmr.msra.gmra.mxu1 %vm326_vm5, %v488_v6 }
  0x5e   : > { %483 = vmatmul.msk.bf16.vlgmr.msra.gmra.mxu2 %vm326_vm5, %v489_v7 }
  0x6a   : > { %v304_v16 = vpop.permute.xlu2 %303 }
  0x72   : > { %v309_v34 = vpop.permute.xlu2 %308 }
  0x80   : > { %v294_v8 = vpop.permute.xlu1 %293  ;;  %v284_v9 = vpop.permute.xlu0 %283 }
  0x88   : > { %v299_v19 = vpop.permute.xlu1 %298  ;;  %v289_v20 = vpop.permute.xlu0 %288 }
  0xda   : > { %v345_v10 = vpop.f32.mrf.mxu0  ;;  %v350_v11 = vpop.f32.mrf.mxu1 }
  0xdb   : > { %v346_v12 = vadd.f32 %v345_v10, %v284_v9  ;;  %v351_v13 = vadd.f32 %v350_v11, %v294_v8 }
  0xdd   : > { %v360_v14 = vmul.f32 %v346_v12, %v262_v62  ;;  %v362_v15 = vmul.f32 %v351_v13, %v262_v62 }
  0xdf   : > { %v366_v17 = vadd.f32 %v360_v14, %v602_v24  ;;  %v368_v18 = vadd.f32 %v362_v15, %v602_v24 }
  0xe1   : > { %372 = vst.msk [vmem:[%s201_s18] sm:$0xff] %vm207_vm0, %v366_v17  ;;  %v355_v21 = vpop.f32.mrf.mxu2 }
  0xe2   : > { %374 = vst.msk [vmem:[%s201_s18 + $0x10] sm:$0xff] %vm207_vm0, %v368_v18  ;;  %v356_v22 = vadd.f32 %v355_v21, %v304_v16  ;;  %v347_v23 = vpop.f32.mrf.mxu0  ;;  %v352_v25 = vpop.f32.mrf.mxu1 }
  0xe3   : > { %v348_v26 = vadd.f32 %v347_v23, %v289_v20  ;;  %v353_v27 = vadd.f32 %v352_v25, %v299_v19 }
  0xe4   : > { %v364_v28 = vmul.f32 %v356_v22, %v262_v62 }
  0xe5   : > { %v361_v29 = vmul.f32 %v348_v26, %v262_v62  ;;  %v363_v30 = vmul.f32 %v353_v27, %v262_v62 }
  0xe6   : > { %v370_v31 = vadd.f32 %v364_v28, %v602_v24 }
  0xe7   : > { %v367_v32 = vadd.f32 %v361_v29, %v602_v24  ;;  %v369_v33 = vadd.f32 %v363_v30, %v602_v24 }
  0xe8   : > { %376 = vst.msk [vmem:[%s201_s18 + $0x20] sm:$0xff] %vm207_vm0, %v370_v31 }
  0xe9   : > { %373 = vst.msk [vmem:[%s201_s18 + $0x8] sm:$0xff] %vm207_vm0, %v367_v32  ;;  %v357_v35 = vpop.f32.mrf.mxu2 }
  0xea   : > { %375 = vst.msk [vmem:[%s201_s18 + $0x18] sm:$0xff] %vm207_vm0, %v369_v33  ;;  %v358_v36 = vadd.f32 %v357_v35, %v309_v34 }
  0xec   : > { %v365_v37 = vmul.f32 %v358_v36, %v262_v62 }
  0xee   : > { %v371_v38 = vadd.f32 %v365_v37, %v602_v24 }
  0xf0   : > { %377 = vst.msk [vmem:[%s201_s18 + $0x28] sm:$0xff] %vm207_vm0, %v371_v38 }
  0xf1 PF: > { %s13_s14 = sadd.s32 1, %s550_s14   ;;  %s668_s12 = smov %s546_s13 }
  0xf2   : > { %p10_p5 = scmp.ge.s32.totalorder %s13_s14, 4   ;;  %s669_s13 = smov %s671_s15 }
  0xf4   :  { %12 = sbr.rel (!%p10_p5) target bundleno = 2 (0x2), region = 62 }

</bundles_post_ra>
